<compile_context>
chip_gen: v6e
topology: v6e:2x2x1
jax: 0.10.0
libtpu: 0.0.40
codegen_flags: <defaults>
</compile_context>

<pallas_src>
import functools
import math

import numpy as np

import jax
import jax.numpy as jnp
from jax.experimental import pallas as pl
from jax.experimental.pallas import tpu as pltpu


# --------------------------------------------------------------------------- #
# Interpolation matrices (compile-time numpy constants).
# --------------------------------------------------------------------------- #
def _out_size(in_size: int, scale: float) -> int:
    # PyTorch computes floor(in * scale) in double precision when scale_factor
    # is given; Python floats are doubles, so this matches.
    return int(math.floor(float(in_size) * float(scale)))


def _bilinear_matrix(in_size: int, scale: float) -> np.ndarray:
    """(out, in) interpolation matrix for half-pixel centres
    (PyTorch align_corners=False, antialias=False semantics).  Weights are
    computed in float64 and returned as float32."""
    out_size = _out_size(in_size, scale)
    rows = np.arange(out_size)
    src = (rows.astype(np.float64) + 0.5) / float(scale) - 0.5
    src = np.clip(src, 0.0, float(in_size - 1))
    i0 = np.floor(src).astype(np.int64)
    i1 = np.minimum(i0 + 1, in_size - 1)
    w1 = src - i0
    w0 = 1.0 - w1
    A = np.zeros((out_size, in_size), dtype=np.float64)
    A[rows, i0] += w0
    A[rows, i1] += w1
    return A.astype(np.float32)


# --------------------------------------------------------------------------- #
# VMEM budgeting / block-size policy.
# --------------------------------------------------------------------------- #
def _pad_up(v: int, m: int) -> int:
    return ((v + m - 1) // m) * m


def _vmem_capacity_bytes() -> int:
    """Physical VMEM of the current TPU generation (conservative fallback)."""
    try:
        info = pltpu.get_tpu_info()
        for name in ("vmem_capacity_bytes", "vmem_bytes", "vmem_size_bytes"):
            cap = getattr(info, name, None)
            if cap:
                return int(cap)
    except Exception:
        pass
    return 64 * 1024 * 1024  # v7x-sized conservative default


def _block_vmem_bytes(b, h, w, hout, wout, x_itemsize, mat_itemsize, h_first):
    """Rough VMEM footprint of one grid step of the multi-plane kernel."""
    hp, wp = _pad_up(h, 8), _pad_up(w, 128)
    hop, wop = _pad_up(hout, 8), _pad_up(wout, 128)
    in_blk = 2 * b * hp * wp * x_itemsize           # double-buffered input slab
    out_blk = 2 * b * hop * wop * x_itemsize        # double-buffered output slab
    # Constant-index_map matrices are fetched once but still double-buffered.
    mats = 2 * (hop * _pad_up(h, 128) + _pad_up(w, 8) * wop) * mat_itemsize
    interm = b * (hop * wp if h_first else hp * wop) * 4   # f32 scratch
    temps = b * hop * wop * 4 + b * (hop * wp if h_first else hp * wop) * 4
    return in_blk + out_blk + mats + interm + temps


def _choose_planes_per_block(nc, h, w, hout, wout, x_itemsize, mat_itemsize,
                             budget, h_first):
    """Planes processed per grid step.  Returns 0 if even one plane does not
    fit the budget (caller then falls back to Hout tiling)."""

    def fits(b):
        return _block_vmem_bytes(b, h, w, hout, wout, x_itemsize, mat_itemsize,
                                 h_first) <= budget

    if not fits(1):
        return 0

    # ~8 MiB of in+out HBM traffic per grid step (mem-bound sweet spot: big
    # enough for >85% of HBM roofline, small enough to keep pipelining).
    plane_slab = (h * w + hout * wout) * x_itemsize
    b = max(1, min(nc, (8 << 20) // max(plane_slab, 1)))

    # When there is enough total data for read/compute/write overlap to matter,
    # keep at least min(nc, 8) grid steps.
    if nc * plane_slab >= (16 << 20):
        b = min(b, max(1, nc // min(nc, 8)))

    while b > 1 and not fits(b):
        b -= 1

    # Even number of grid steps so v7x's two TensorCores split the work evenly.
    steps = pl.cdiv(nc, b)
    if steps > 1 and steps % 2 == 1:
        b = max(1, pl.cdiv(nc, steps + 1))

    # Prefer an exact divisor of nc close to the target (no ragged last block).
    for d in range(b, 0, -1):
        if nc % d == 0 and 2 * d > b:
            return d
    return b


def _choose_hout_tile(h, w, hout, wout, x_itemsize, mat_itemsize, budget):
    """Row-tile of Hout for the oversized-plane fallback path."""
    if hout <= 8:
        return hout

    def fits(th):
        xb = 2 * _pad_up(h, 8) * _pad_up(w, 128) * x_itemsize
        ob = 2 * _pad_up(th, 8) * _pad_up(wout, 128) * x_itemsize
        mats = 2 * (_pad_up(th, 8) * _pad_up(h, 128)
                    + _pad_up(w, 8) * _pad_up(wout, 128)) * mat_itemsize
        tmp = _pad_up(th, 8) * (_pad_up(w, 128) + _pad_up(wout, 128)) * 4
        return xb + ob + mats + tmp <= budget

    th = min((hout // 8) * 8, 1024)
    while th > 8 and not fits(th):
        th -= 8
    return max(8, th)


# --------------------------------------------------------------------------- #
# Kernels.
# --------------------------------------------------------------------------- #
def _interp_kernel(x_ref, ah_ref, awt_ref, o_ref, y_ref, *, h_first):
    # x_ref  : (B, H, W)        B input planes
    # ah_ref : (Hout, H)        row (height) interpolation matrix
    # awt_ref: (W, Wout)        column (width) interpolation matrix, transposed
    # o_ref  : (B, Hout, Wout)
    # y_ref  : f32 scratch, (B, Hout, W) if h_first else (B, H, Wout)
    B, H, W = x_ref.shape
    Hout = ah_ref.shape[0]
    Wout = awt_ref.shape[1]
    cdt = ah_ref.dtype  # compute dtype (matrices were cast once by the wrapper)

    if h_first:
        # Pass 1 (per plane): y[b] = A_h @ x[b].  A_h is read from its single
        # VMEM copy; no B-replicated broadcast is materialised.
        @pl.loop(0, B)
        def _(b):
            y_ref[b] = jnp.dot(ah_ref[...], x_ref[b],
                               preferred_element_type=jnp.float32)

        # Pass 2 (folded over planes): one MXU-dense matmul produces the whole
        # output slab with lane-dense stores.
        y2 = y_ref[...].astype(cdt).reshape(B * Hout, W)
        out = jnp.dot(y2, awt_ref[...], preferred_element_type=jnp.float32)
        o_ref[...] = out.reshape(B, Hout, Wout).astype(o_ref.dtype)
    else:
        # Pass 1 (folded over planes): shrink width first on the full slab.
        x2 = x_ref[...].reshape(B * H, W)
        y = jnp.dot(x2, awt_ref[...], preferred_element_type=jnp.float32)
        y_ref[...] = y.reshape(B, H, Wout)

        # Pass 2 (per plane) writes straight into the output block.
        @pl.loop(0, B)
        def _(b):
            o_ref[b] = jnp.dot(
                ah_ref[...], y_ref[b].astype(cdt),
                preferred_element_type=jnp.float32).astype(o_ref.dtype)


def _interp_kernel_htile(x_ref, ah_ref, awt_ref, o_ref):
    # Fallback for planes too large for the multi-plane path.
    # x_ref: (1, H, W); ah_ref: (TH, H); awt_ref: (W, Wout); o_ref: (1, TH, Wout)
    y = jnp.dot(ah_ref[...], x_ref[0], preferred_element_type=jnp.float32)
    out = jnp.dot(y.astype(awt_ref.dtype), awt_ref[...],
                  preferred_element_type=jnp.float32)
    o_ref[0] = out.astype(o_ref.dtype)


# --------------------------------------------------------------------------- #
# Public wrapper.
# --------------------------------------------------------------------------- #
@functools.partial(jax.jit, static_argnames=("scale_factor", "mode"))
def interpolate(x: jnp.ndarray, scale_factor=2.0, mode: str = "bilinear"):
    """Pallas equivalent of Interpolate(scale_factor, mode).forward(x), x NCHW."""
    if mode != "bilinear":
        # TODO(synk): only 'bilinear' (align_corners=False) is implemented.
        raise NotImplementedError(f"mode={mode!r} not implemented")
    if x.ndim != 4:
        raise ValueError(f"expected NCHW input, got shape {x.shape}")
    if not jnp.issubdtype(x.dtype, jnp.floating):
        raise TypeError("bilinear interpolation expects a floating-point input")

    if isinstance(scale_factor, (tuple, list)):
        sh, sw = float(scale_factor[0]), float(scale_factor[1])
    else:
        sh = sw = float(scale_factor)

    N, C, H, W = x.shape
    Hout, Wout = _out_size(H, sh), _out_size(W, sw)
    if Hout < 1 or Wout < 1:
        raise ValueError("scale_factor produces an empty output")

    # Compute dtype: keep bf16 operands on the MXU for bf16 inputs; everything
    # else computes in f32.  Weights are always *built* in f64/f32 and only
    # rounded once to the compute dtype.
    cdt = x.dtype
    if cdt not in (jnp.dtype(jnp.float32), jnp.dtype(jnp.bfloat16)):
        cdt = jnp.dtype(jnp.float32)

    A_h = jnp.asarray(_bilinear_matrix(H, sh), dtype=cdt)                 # (Hout, H)
    A_wT = jnp.asarray(np.ascontiguousarray(_bilinear_matrix(W, sw).T),
                       dtype=cdt)                                          # (W, Wout)

    NC = N * C
    x_itemsize = jnp.dtype(x.dtype).itemsize
    mat_itemsize = jnp.dtype(cdt).itemsize

    vmem_cap = _vmem_capacity_bytes()
    budget = (vmem_cap * 9) // 16          # what the block chooser may plan for
    vmem_limit = (vmem_cap * 3) // 4       # scoped VMEM limit handed to Mosaic

    # Upscaling width: per-plane pass first (on the small input), MXU-dense
    # folded pass second.  Downscaling: folded pass first on the full slab.
    h_first = Wout >= W

    cost = pl.CostEstimate(
        flops=2 * NC * (Hout * W * (H + Wout) if h_first
                        else H * Wout * (W + Hout)),
        transcendentals=0,
        bytes_accessed=NC * (H * W + Hout * Wout) * x_itemsize,
    )

    x_flat = x.reshape(NC, H, W)  # contiguous reshape, free

    B = _choose_planes_per_block(NC, H, W, Hout, Wout, x_itemsize,
                                 mat_itemsize, budget, h_first)

    if B >= 1:
        scratch_shape = (B, Hout, W) if h_first else (B, H, Wout)
        # NOTE: A_h / A_wT have constant index_maps, so Pallas DMAs them into
        # VMEM once and never refetches them across grid steps.
        # TODO(synk): pipeline_mode=pl.Buffered(1) on the matrix BlockSpecs
        # would reclaim their spare double-buffer; kept at the default for
        # compatibility (the extra buffer is accounted for in the VMEM budget).
        out_flat = pl.pallas_call(
            functools.partial(_interp_kernel, h_first=h_first),
            out_shape=jax.ShapeDtypeStruct((NC, Hout, Wout), x.dtype),
            grid_spec=pltpu.PrefetchScalarGridSpec(
                num_scalar_prefetch=0,
                grid=(pl.cdiv(NC, B),),
                in_specs=[
                    pl.BlockSpec((B, H, W), lambda i: (i, 0, 0)),
                    pl.BlockSpec((Hout, H), lambda i: (0, 0)),
                    pl.BlockSpec((W, Wout), lambda i: (0, 0)),
                ],
                out_specs=pl.BlockSpec((B, Hout, Wout), lambda i: (i, 0, 0)),
                scratch_shapes=[pltpu.VMEM(scratch_shape, jnp.float32)],
            ),
            compiler_params=pltpu.CompilerParams(
                dimension_semantics=("parallel",),
                vmem_limit_bytes=vmem_limit,
            ),
            cost_estimate=cost,
        )(x_flat, A_h, A_wT)
    else:
        # A single plane (+ intermediates) exceeds the budget: tile over Hout
        # with row-blocks of A_h.  The input plane block index only depends on
        # the plane axis, so x is fetched once per plane.
        # TODO(synk): planes where even one Hout row-tile + a full input plane
        # do not fit VMEM would additionally need W tiling; not implemented.
        TH = _choose_hout_tile(H, W, Hout, Wout, x_itemsize, mat_itemsize,
                               budget)
        out_flat = pl.pallas_call(
            _interp_kernel_htile,
            out_shape=jax.ShapeDtypeStruct((NC, Hout, Wout), x.dtype),
            grid_spec=pltpu.PrefetchScalarGridSpec(
                num_scalar_prefetch=0,
                grid=(NC, pl.cdiv(Hout, TH)),
                in_specs=[
                    pl.BlockSpec((1, H, W), lambda i, h: (i, 0, 0)),
                    pl.BlockSpec((TH, H), lambda i, h: (h, 0)),
                    pl.BlockSpec((W, Wout), lambda i, h: (0, 0)),
                ],
                out_specs=pl.BlockSpec((1, TH, Wout), lambda i, h: (i, h, 0)),
            ),
            compiler_params=pltpu.CompilerParams(
                dimension_semantics=("parallel", "arbitrary"),
                vmem_limit_bytes=vmem_limit,
            ),
            cost_estimate=cost,
        )(x_flat, A_h, A_wT)

    return out_flat.reshape(N, C, Hout, Wout)  # contiguous reshape, free


# --------------------------------------------------------------------------- #
# Reference + demo.
# --------------------------------------------------------------------------- #
def _reference(x, scale_factor):
    """Plain-JAX reference using the same separable formulation."""
    if isinstance(scale_factor, (tuple, list)):
        sh, sw = float(scale_factor[0]), float(scale_factor[1])
    else:
        sh = sw = float(scale_factor)
    N, C, H, W = x.shape
    A_h = jnp.asarray(_bilinear_matrix(H, sh))
    A_w = jnp.asarray(_bilinear_matrix(W, sw))
    y = jnp.einsum("ph,nchw,qw->ncpq", A_h, x.astype(jnp.float32), A_w)
    return y.astype(x.dtype)


if __name__ == "__main__":
    key = jax.random.PRNGKey(0)
    N, C, H, W = 2, 4, 16, 16
    scale_factor = 2.0
    x = jax.random.normal(key, (N, C, H, W), dtype=jnp.float32)

    out = jax.block_until_ready(
        interpolate(x, scale_factor=scale_factor, mode="bilinear"))
    ref = jax.block_until_ready(_reference(x, scale_factor))

    assert out.shape == (N, C, 32, 32), out.shape
    err = float(jnp.max(jnp.abs(out.astype(jnp.float32) - ref.astype(jnp.float32))))
    assert err < 1e-4, err

    print("KERNEL_OK")
</pallas_src>

<mosaic_0001>
module attributes {stable_mosaic.version = 11 : i64} {
  func.func @_interp_kernel(%arg0: i32, %arg1: memref<8x16x16xf32, #tpu.memory_space<vmem>>, %arg2: memref<32x16xf32, #tpu.memory_space<vmem>>, %arg3: memref<16x32xf32, #tpu.memory_space<vmem>>, %arg4: memref<8x32x32xf32, #tpu.memory_space<vmem>>, %arg5: memref<8x32x16xf32, #tpu.memory_space<vmem>>) attributes {dimension_semantics = [#tpu.dimension_semantics<parallel>], iteration_bounds = array<i64: 1>, scalar_prefetch = 0 : i64, scratch_operands = 1 : i64, tpu.core_type = #tpu.core_type<tc>, window_params = [{transform_indices = @transform_0, window_bounds = array<i64: 8, 16, 16>}, {pipeline_mode = #tpu.pipeline_mode<synchronous>, transform_indices = @transform_1, window_bounds = array<i64: 32, 16>}, {pipeline_mode = #tpu.pipeline_mode<synchronous>, transform_indices = @transform_2, window_bounds = array<i64: 16, 32>}, {transform_indices = @transform_3, window_bounds = array<i64: 8, 32, 32>}]} {
    %c0_i32 = arith.constant 0 : i32
    %c8_i32 = arith.constant 8 : i32
    %0 = arith.addi %c0_i32, %c8_i32 : i32
    %c1_i32 = arith.constant 1 : i32
    scf.for %arg6 = %c0_i32 to %0 step %c1_i32  : i32 {
      %c1_i32_8 = arith.constant 1 : i32
      %7 = arith.muli %arg6, %c1_i32_8 : i32
      %c0_i32_9 = arith.constant 0 : i32
      %8 = arith.addi %c0_i32_9, %7 : i32
      %c0_10 = arith.constant 0 : index
      %c0_11 = arith.constant 0 : index
      %9 = vector.load %arg2[%c0_10, %c0_11] : memref<32x16xf32, #tpu.memory_space<vmem>>, vector<32x16xf32>
      %10 = arith.index_cast %8 : i32 to index
      %c0_12 = arith.constant 0 : index
      %c0_13 = arith.constant 0 : index
      %11 = vector.load %arg1[%10, %c0_12, %c0_13] : memref<8x16x16xf32, #tpu.memory_space<vmem>>, vector<1x16x16xf32>
      %12 = vector.shape_cast %11 : vector<1x16x16xf32> to vector<16x16xf32>
      %cst_14 = arith.constant dense<0.000000e+00> : vector<32x16xf32>
      %13 = tpu.matmul %9, %12, %cst_14 {dimension_numbers = #tpu.dot_dimension_numbers<[1], [0], [0], [1], [0, 0, 1, 1], [], []>} : vector<32x16xf32>, vector<16x16xf32>, vector<32x16xf32> -> vector<32x16xf32>
      %14 = arith.index_cast %8 : i32 to index
      %c0_15 = arith.constant 0 : index
      %c0_16 = arith.constant 0 : index
      %15 = vector.load %arg5[%14, %c0_15, %c0_16] : memref<8x32x16xf32, #tpu.memory_space<vmem>>, vector<1x32x16xf32>
      %16 = vector.shape_cast %15 : vector<1x32x16xf32> to vector<32x16xf32>
      %17 = vector.shape_cast %13 : vector<32x16xf32> to vector<1x32x16xf32>
      tpu.vector_store %arg5[%14, %c0_15, %c0_16], %17 {strides = array<i32>} : memref<8x32x16xf32, #tpu.memory_space<vmem>>, vector<1x32x16xf32>,
    }
    %c8_i32_0 = arith.constant 8 : i32
    %c0 = arith.constant 0 : index
    %c0_1 = arith.constant 0 : index
    %c0_2 = arith.constant 0 : index
    %1 = vector.load %arg5[%c0, %c0_1, %c0_2] : memref<8x32x16xf32, #tpu.memory_space<vmem>>, vector<8x32x16xf32>
    %2 = vector.shape_cast %1 : vector<8x32x16xf32> to vector<256x16xf32>
    %c0_3 = arith.constant 0 : index
    %c0_4 = arith.constant 0 : index
    %3 = vector.load %arg3[%c0_3, %c0_4] : memref<16x32xf32, #tpu.memory_space<vmem>>, vector<16x32xf32>
    %cst = arith.constant dense<0.000000e+00> : vector<256x32xf32>
    %4 = tpu.matmul %2, %3, %cst {dimension_numbers = #tpu.dot_dimension_numbers<[1], [0], [0], [1], [0, 0, 1, 1], [], []>} : vector<256x16xf32>, vector<16x32xf32>, vector<256x32xf32> -> vector<256x32xf32>
    %5 = vector.shape_cast %4 : vector<256x32xf32> to vector<8x32x32xf32>
    %c0_5 = arith.constant 0 : index
    %c0_6 = arith.constant 0 : index
    %c0_7 = arith.constant 0 : index
    %6 = vector.load %arg4[%c0_5, %c0_6, %c0_7] : memref<8x32x32xf32, #tpu.memory_space<vmem>>, vector<8x32x32xf32>
    tpu.vector_store %arg4[%c0_5, %c0_6, %c0_7], %5 {strides = array<i32>} : memref<8x32x32xf32, #tpu.memory_space<vmem>>, vector<8x32x32xf32>,
    return
  }
  func.func @transform_0(%arg0: i32) -> (i32, i32, i32) {
    %c0_i32 = arith.constant 0 : i32
    %c0_i32_0 = arith.constant 0 : i32
    %c0_i32_1 = arith.constant 0 : i32
    return %arg0, %c0_i32, %c0_i32_0 : i32, i32, i32
  }
  func.func @transform_1(%arg0: i32) -> (i32, i32) {
    %c0_i32 = arith.constant 0 : i32
    %c0_i32_0 = arith.constant 0 : i32
    %c0_i32_1 = arith.constant 0 : i32
    return %c0_i32, %c0_i32_0 : i32, i32
  }
  func.func @transform_2(%arg0: i32) -> (i32, i32) {
    %c0_i32 = arith.constant 0 : i32
    %c0_i32_0 = arith.constant 0 : i32
    %c0_i32_1 = arith.constant 0 : i32
    return %c0_i32, %c0_i32_0 : i32, i32
  }
  func.func @transform_3(%arg0: i32) -> (i32, i32, i32) {
    %c0_i32 = arith.constant 0 : i32
    %c0_i32_0 = arith.constant 0 : i32
    %c0_i32_1 = arith.constant 0 : i32
    return %arg0, %c0_i32, %c0_i32_0 : i32, i32, i32
  }
}

</mosaic_0001>

<bundles_post_ra>
// kernel: interpolate.1
= control target key start
LH: loop header
LB: loop body
LE: loop exit
PB: predicated region body
PF: predicated region fallthrough
CT: control target
= control target key end

     0   :  { %8 = vsyncpa [#allocation4], 0  ;;  %s978_s0 = inlined_call_operand.hbm [shape: f32[8,16,16], index: 0, kind: input, shape index: {}]   ;;  %s979_s1 = inlined_call_operand.hbm [shape: f32[32,16], index: 1, kind: input, shape index: {}]   ;;  %s980_s2 = inlined_call_operand.hbm [shape: f32[16,32], index: 2, kind: input, shape index: {}]   ;;  %s981_s3 = inlined_call_operand.hbm [shape: f32[8,32,32], index: 3, kind: output, shape index: {}]  }
   0x1   :  { %9 = vsyncpa [#allocation7], 0 }
   0x2   :  { %10 = vsyncpa [#allocation5], 0  ;;  %s846_s12 = smov [#allocation6]   ;;  %s847_s14 = smov [#allocation3]  }
   0x3   :  { %s28_s13 = sshll.u32 %s846_s12, 4  ;;  %s16_s15 = sshll.u32 %s847_s14, 4  ;;  %s29_s13 = int_to_ptr.vmem [resolvable:$true] %s28_s13  ;;  %s17_s15 = int_to_ptr.vmem [resolvable:$true] %s16_s15 }
   0x4   :  { %s760_s16 = scalar_lea.vmem %s29_s13, 512  ;;  %p765_p1 = scmp.lt.s32.totalorder %s29_s13, %s29_s13 }
   0x5   :  { %p761_p0 = scmp.ne.s32.totalorder %s29_s13, %s760_s16  ;;  %p766_p2 = scmp.lt.s32.totalorder %s760_s16, %s760_s16 }
   0x7   :  { %p767_p3 = por %p766_p2, %p765_p1 }
   0x9   :  { %p768_p4 = pnand %p767_p3, %p761_p0 }
   0xb   :  { %771 = shalt.err (!%p768_p4)
}
   0xc   :  { %s848_s17 = smov 128   ;;  %s849_s18 = smov 8  }
   0xd   :  { %34 = dma.hbm_to_vmem [thread:$0]  %s979_s1, 512, %s29_s13, [#allocation7], %s848_s17, %s848_s17, %s849_s18  }
   0xe   :  { %s780_s21 = scalar_lea.vmem %s17_s15, 2048  ;;  %p785_p6 = scmp.lt.s32.totalorder %s17_s15, %s17_s15 }
   0xf   :  { %p781_p5 = scmp.ne.s32.totalorder %s17_s15, %s780_s21  ;;  %p786_p7 = scmp.lt.s32.totalorder %s780_s21, %s780_s21 }
  0x11   :  { %p787_p8 = por %p786_p7, %p785_p6 }
  0x13   :  { %p788_p9 = pnand %p787_p8, %p781_p5 }
  0x15   :  { %791 = shalt.err (!%p788_p9)
}
  0x16   :  { %22 = dma.hbm_to_vmem [thread:$0]  %s978_s0, 2048, %s17_s15, [#allocation4], %s848_s17, %s848_s17, %s849_s18  }
  0x17   :  { %s850_s24 = smov [#allocation8]  }
  0x18   :  { %s40_s25 = sshll.u32 %s850_s24, 4  ;;  %s41_s25 = int_to_ptr.vmem [resolvable:$true] %s40_s25 }
  0x19   :  { %s800_s26 = scalar_lea.vmem %s41_s25, 256  ;;  %p805_p11 = scmp.lt.s32.totalorder %s41_s25, %s41_s25 }
  0x1a   :  { %p801_p10 = scmp.ne.s32.totalorder %s41_s25, %s800_s26  ;;  %p806_p12 = scmp.lt.s32.totalorder %s800_s26, %s800_s26 }
  0x1c   :  { %p807_p13 = por %p806_p12, %p805_p11 }
  0x1e   :  { %p808_p0 = pnand %p807_p13, %p801_p10 }
  0x20   :  { %811 = shalt.err (!%p808_p0)
}
  0x21   :  { %46 = dma.hbm_to_vmem [thread:$0]  %s980_s2, 256, %s41_s25, [#allocation7], %s848_s17, %s848_s17, %s849_s18  }
  0x22   :  { %836 = dma.done.wait [#allocation4], 2048  }
  0x23   :  { %837 = vsyncadd [#allocation4], 4294965248 }
  0x24   :  { %838 = dma.done.wait [#allocation7], 768  }
  0x25   :  { %839 = vsyncadd [#allocation7], 4294966528  ;;  %s890_s0 = smov 0  }
  0x26 LB: > { %v62_v0 = vld [vmem:[#allocation6] sm:$0xff]  ;;  %vm70_vm0 = vcmask 130048   ;;  %v64_v1 = vld [vmem:[#allocation6 + $0x10] sm:$0xff]  ;;  %s590_s2 = sshll.u32 %s844_s0, 4  ;;  %v63_v4 = vld [vmem:[#allocation6 + $0x8] sm:$0xff]  ;;  %s595_s29 = sshll.u32 %s844_s0, 5  ;;  %s844_s0 = sphi %s890_s0, %s61_s0  }
  0x27   : > { %672 = vmatprep.mubr.msk.f32.mxu0 %vm70_vm0, %v62_v0  ;;  %675 = vmatprep.mubr.msk.f32.mxu1 %vm70_vm0, %v64_v1  ;;  %s67_s28 = scalar_lea.vmem [#allocation3], %s590_s2  ;;  %v65_v5 = vld [vmem:[#allocation6 + $0x18] sm:$0xff]  ;;  %s169_s30 = scalar_lea.vmem [#allocation2], %s595_s29 }
  0x28   : > { %v69_v2 = vld [vmem:[%s67_s28 + $0x8] sm:$0xff]  ;;  %v68_v3 = vld [vmem:[%s67_s28] sm:$0xff]  ;;  %s61_s0 = sadd.s32 1, %s844_s0  }
  0x29   : > { %668 = vmatprep.subr.mxu0 %v69_v2  ;;  %730 = vmatprep.subr.mxu1 %v69_v2  ;;  %p58_p1 = scmp.ge.s32.totalorder %s61_s0, 8  }
  0x2a   : > { %669 = vmatpush3.msra.mxu0 %v69_v2  ;;  %732 = vmatpush3.msra.mxu1 %v69_v2  ;;  %v207_v10 = vld [vmem:[#allocation8 + $0x8] sm:$0xff] (%p58_p1)  ;;  %v206_v11 = vld [vmem:[#allocation8] sm:$0xff] (%p58_p1)  ;;  %vm530_vm1 = vcmask (%p58_p1), 261120   ;;  %s851_s4 = smov (%p58_p1), [#allocation9]  }
  0x2b   : > { %670 = vmatprep.subr.mxu0 %v68_v3  ;;  %731 = vmatprep.subr.mxu1 %v68_v3  ;;  %s568_s5 = sshll.u32 (%p58_p1), %s851_s4, 4  ;;  %s569_s5 = int_to_ptr.vmem [resolvable:$true] %s568_s5 }
  0x2c   : > { %671 = vmatpush3.msra.mxu0 %v68_v3  ;;  %733 = vmatpush3.msra.mxu1 %v68_v3  ;;  %s812_s6 = scalar_lea.vmem (%p58_p1), %s569_s5, 4096  ;;  %p817_p3 = scmp.lt.s32.totalorder (%p58_p1), %s569_s5, %s569_s5 }
  0x2d   : > { %673 = vmatmul.mubr.msk.f32.vlgmr.msra.gmra.mxu0 %vm70_vm0, %v63_v4  ;;  %676 = vmatmul.mubr.msk.f32.vlgmr.msra.gmra.mxu1 %vm70_vm0, %v65_v5  ;;  %p813_p2 = scmp.ne.s32.totalorder (%p58_p1), %s569_s5, %s812_s6  ;;  %p818_p4 = scmp.lt.s32.totalorder (%p58_p1), %s812_s6, %s812_s6 }
  0x2e   :  { %678 = vmatprep.subr.mxu0 (%p58_p1), %v207_v10  ;;  %734 = vmatprep.subr.mxu1 (%p58_p1), %v207_v10 }
  0x2f   :  { %679 = vmatpush3.msra.mxu0 (%p58_p1), %v207_v10  ;;  %736 = vmatpush3.msra.mxu1 (%p58_p1), %v207_v10  ;;  %p819_p5 = por (%p58_p1), %p818_p4, %p817_p3 }
  0x30   :  { %680 = vmatprep.subr.mxu0 (%p58_p1), %v206_v11  ;;  %735 = vmatprep.subr.mxu1 (%p58_p1), %v206_v11 }
  0x31   :  { %681 = vmatpush3.msra.mxu0 (%p58_p1), %v206_v11  ;;  %737 = vmatpush3.msra.mxu1 (%p58_p1), %v206_v11  ;;  %p820_p6 = pnand (%p58_p1), %p819_p5, %p813_p2 }
  0xec   :  { %60 = sbr.rel (!%p58_p1) target bundleno = 38 (0x26), region = 53 }
  0xed   : > { %v674_v6 = vpop.f32.mrf.mxu0  ;;  %v677_v7 = vpop.f32.mrf.mxu1 }
  0xee   : > { %171 = vst.msk [vmem:[%s169_s30 + $0x8] sm:$0xff] %vm70_vm0, %v674_v6  ;;  %173 = vst.msk [vmem:[%s169_s30 + $0x18] sm:$0xff] %vm70_vm0, %v677_v7 }
  0xef   : > { %v149_v8 = vpop.f32.mrf.mxu0  ;;  %v159_v9 = vpop.f32.mrf.mxu1 }
  0xf0   : > { %170 = vst.msk [vmem:[%s169_s30] sm:$0xff] %vm70_vm0, %v149_v8  ;;  %172 = vst.msk [vmem:[%s169_s30 + $0x10] sm:$0xff] %vm70_vm0, %v159_v9 }
  0xf7   :  { %v174_v12 = vld [vmem:[#allocation2] sm:$0xff]  ;;  %v175_v14 = vld [vmem:[#allocation2 + $0x8] sm:$0xff]  ;;  %v176_v16 = vld [vmem:[#allocation2 + $0x10] sm:$0xff] }
  0xf8   :  { %v190_v13 = vld [vmem:[#allocation2 + $0x80] sm:$0xff]  ;;  %v191_v15 = vld [vmem:[#allocation2 + $0x88] sm:$0xff]  ;;  %v192_v17 = vld [vmem:[#allocation2 + $0x90] sm:$0xff]  ;;  %682 = vmatprep.mubr.msk.f32.mxu0 %vm70_vm0, %v174_v12 }
  0xf9   :  { %706 = vmatprep.mubr.msk.f32.mxu1 %vm70_vm0, %v190_v13  ;;  %683 = vmatmul.mubr.msk.f32.vlgmr.msra.gmra.mxu0 %vm70_vm0, %v175_v14  ;;  %v177_v18 = vld [vmem:[#allocation2 + $0x18] sm:$0xff]  ;;  %v178_v20 = vld [vmem:[#allocation2 + $0x20] sm:$0xff]  ;;  %v179_v22 = vld [vmem:[#allocation2 + $0x28] sm:$0xff] }
  0xfa   :  { %707 = vmatmul.mubr.msk.f32.vlgmr.msra.gmra.mxu1 %vm70_vm0, %v191_v15  ;;  %685 = vmatprep.mubr.msk.f32.mxu0 %vm70_vm0, %v176_v16  ;;  %v193_v19 = vld [vmem:[#allocation2 + $0x98] sm:$0xff]  ;;  %v194_v21 = vld [vmem:[#allocation2 + $0xa0] sm:$0xff]  ;;  %v195_v23 = vld [vmem:[#allocation2 + $0xa8] sm:$0xff] }
  0xfb   :  { %709 = vmatprep.mubr.msk.f32.mxu1 %vm70_vm0, %v192_v17  ;;  %v180_v24 = vld [vmem:[#allocation2 + $0x30] sm:$0xff]  ;;  %v181_v26 = vld [vmem:[#allocation2 + $0x38] sm:$0xff]  ;;  %v182_v28 = vld [vmem:[#allocation2 + $0x40] sm:$0xff] }
  0xfc   :  { %v196_v25 = vld [vmem:[#allocation2 + $0xb0] sm:$0xff]  ;;  %v197_v27 = vld [vmem:[#allocation2 + $0xb8] sm:$0xff]  ;;  %v198_v29 = vld [vmem:[#allocation2 + $0xc0] sm:$0xff] }
  0xfd   :  { %686 = vmatmul.mubr.msk.f32.gmra.mxu0 %vm70_vm0, %v177_v18  ;;  %v183_v30 = vld [vmem:[#allocation2 + $0x48] sm:$0xff]  ;;  %v184_v32 = vld [vmem:[#allocation2 + $0x50] sm:$0xff]  ;;  %v185_v34 = vld [vmem:[#allocation2 + $0x58] sm:$0xff] }
  0xfe   :  { %710 = vmatmul.mubr.msk.f32.gmra.mxu1 %vm70_vm0, %v193_v19  ;;  %688 = vmatprep.mubr.msk.f32.mxu0 %vm70_vm0, %v178_v20  ;;  %v199_v31 = vld [vmem:[#allocation2 + $0xc8] sm:$0xff]  ;;  %v200_v33 = vld [vmem:[#allocation2 + $0xd0] sm:$0xff]  ;;  %v201_v35 = vld [vmem:[#allocation2 + $0xd8] sm:$0xff] }
  0xff   :  { %712 = vmatprep.mubr.msk.f32.mxu1 %vm70_vm0, %v194_v21  ;;  %v186_v36 = vld [vmem:[#allocation2 + $0x60] sm:$0xff]  ;;  %v187_v38 = vld [vmem:[#allocation2 + $0x68] sm:$0xff]  ;;  %v188_v40 = vld [vmem:[#allocation2 + $0x70] sm:$0xff] }
 0x100   :  { %v202_v37 = vld [vmem:[#allocation2 + $0xe0] sm:$0xff]  ;;  %v203_v39 = vld [vmem:[#allocation2 + $0xe8] sm:$0xff]  ;;  %v204_v41 = vld [vmem:[#allocation2 + $0xf0] sm:$0xff] }
 0x101   :  { %689 = vmatmul.mubr.msk.f32.gmra.mxu0 %vm70_vm0, %v179_v22  ;;  %v189_v42 = vld [vmem:[#allocation2 + $0x78] sm:$0xff] }
 0x102   :  { %713 = vmatmul.mubr.msk.f32.gmra.mxu1 %vm70_vm0, %v195_v23  ;;  %691 = vmatprep.mubr.msk.f32.mxu0 %vm70_vm0, %v180_v24  ;;  %v205_v43 = vld [vmem:[#allocation2 + $0xf8] sm:$0xff] }
 0x103   :  { %715 = vmatprep.mubr.msk.f32.mxu1 %vm70_vm0, %v196_v25 }
 0x105   :  { %692 = vmatmul.mubr.msk.f32.gmra.mxu0 %vm70_vm0, %v181_v26 }
 0x106   :  { %716 = vmatmul.mubr.msk.f32.gmra.mxu1 %vm70_vm0, %v197_v27  ;;  %694 = vmatprep.mubr.msk.f32.mxu0 %vm70_vm0, %v182_v28 }
 0x107   :  { %718 = vmatprep.mubr.msk.f32.mxu1 %vm70_vm0, %v198_v29 }
 0x109   :  { %695 = vmatmul.mubr.msk.f32.gmra.mxu0 %vm70_vm0, %v183_v30 }
 0x10a   :  { %719 = vmatmul.mubr.msk.f32.gmra.mxu1 %vm70_vm0, %v199_v31  ;;  %697 = vmatprep.mubr.msk.f32.mxu0 %vm70_vm0, %v184_v32 }
 0x10b   :  { %721 = vmatprep.mubr.msk.f32.mxu1 %vm70_vm0, %v200_v33 }
 0x10d   :  { %698 = vmatmul.mubr.msk.f32.gmra.mxu0 %vm70_vm0, %v185_v34 }
 0x10e   :  { %722 = vmatmul.mubr.msk.f32.gmra.mxu1 %vm70_vm0, %v201_v35  ;;  %700 = vmatprep.mubr.msk.f32.mxu0 %vm70_vm0, %v186_v36 }
 0x10f   :  { %724 = vmatprep.mubr.msk.f32.mxu1 %vm70_vm0, %v202_v37 }
 0x111   :  { %701 = vmatmul.mubr.msk.f32.gmra.mxu0 %vm70_vm0, %v187_v38 }
 0x112   :  { %725 = vmatmul.mubr.msk.f32.gmra.mxu1 %vm70_vm0, %v203_v39  ;;  %703 = vmatprep.mubr.msk.f32.mxu0 %vm70_vm0, %v188_v40 }
 0x113   :  { %727 = vmatprep.mubr.msk.f32.mxu1 %vm70_vm0, %v204_v41 }
 0x115   :  { %704 = vmatmul.mubr.msk.f32.gmra.mxu0 %vm70_vm0, %v189_v42 }
 0x116   :  { %728 = vmatmul.mubr.msk.f32.gmra.mxu1 %vm70_vm0, %v205_v43 }
 0x1b9   :  { %v684_v44 = vpop.f32.mrf.mxu0 }
 0x1ba   :  { %v708_v45 = vpop.f32.mrf.mxu1  ;;  %532 = vst.msk [vmem:[#allocation9 + $0x8] sm:$0xff] %vm530_vm1, %v684_v44 }
 0x1bb   :  { %548 = vst.msk [vmem:[#allocation9 + $0x88] sm:$0xff] %vm530_vm1, %v708_v45  ;;  %v371_v46 = vpop.f32.mrf.mxu0 }
 0x1bc   :  { %v451_v47 = vpop.f32.mrf.mxu1  ;;  %531 = vst.msk [vmem:[#allocation9] sm:$0xff] %vm530_vm1, %v371_v46 }
 0x1bd   :  { %547 = vst.msk [vmem:[#allocation9 + $0x80] sm:$0xff] %vm530_vm1, %v451_v47  ;;  %v687_v48 = vpop.f32.mrf.mxu0 }
 0x1be   :  { %v711_v49 = vpop.f32.mrf.mxu1  ;;  %534 = vst.msk [vmem:[#allocation9 + $0x18] sm:$0xff] %vm530_vm1, %v687_v48 }
 0x1bf   :  { %550 = vst.msk [vmem:[#allocation9 + $0x98] sm:$0xff] %vm530_vm1, %v711_v49  ;;  %v381_v50 = vpop.f32.mrf.mxu0 }
 0x1c0   :  { %v461_v51 = vpop.f32.mrf.mxu1  ;;  %533 = vst.msk [vmem:[#allocation9 + $0x10] sm:$0xff] %vm530_vm1, %v381_v50 }
 0x1c1   :  { %549 = vst.msk [vmem:[#allocation9 + $0x90] sm:$0xff] %vm530_vm1, %v461_v51  ;;  %v690_v52 = vpop.f32.mrf.mxu0 }
 0x1c2   :  { %v714_v53 = vpop.f32.mrf.mxu1  ;;  %536 = vst.msk [vmem:[#allocation9 + $0x28] sm:$0xff] %vm530_vm1, %v690_v52 }
 0x1c3   :  { %552 = vst.msk [vmem:[#allocation9 + $0xa8] sm:$0xff] %vm530_vm1, %v714_v53  ;;  %v391_v54 = vpop.f32.mrf.mxu0 }
 0x1c4   :  { %v471_v55 = vpop.f32.mrf.mxu1  ;;  %535 = vst.msk [vmem:[#allocation9 + $0x20] sm:$0xff] %vm530_vm1, %v391_v54 }
 0x1c5   :  { %551 = vst.msk [vmem:[#allocation9 + $0xa0] sm:$0xff] %vm530_vm1, %v471_v55  ;;  %v693_v56 = vpop.f32.mrf.mxu0 }
 0x1c6   :  { %v717_v57 = vpop.f32.mrf.mxu1  ;;  %538 = vst.msk [vmem:[#allocation9 + $0x38] sm:$0xff] %vm530_vm1, %v693_v56 }
 0x1c7   :  { %554 = vst.msk [vmem:[#allocation9 + $0xb8] sm:$0xff] %vm530_vm1, %v717_v57  ;;  %v401_v58 = vpop.f32.mrf.mxu0 }
 0x1c8   :  { %v481_v59 = vpop.f32.mrf.mxu1  ;;  %537 = vst.msk [vmem:[#allocation9 + $0x30] sm:$0xff] %vm530_vm1, %v401_v58 }
 0x1c9   :  { %553 = vst.msk [vmem:[#allocation9 + $0xb0] sm:$0xff] %vm530_vm1, %v481_v59  ;;  %v696_v60 = vpop.f32.mrf.mxu0 }
 0x1ca   :  { %v720_v61 = vpop.f32.mrf.mxu1  ;;  %540 = vst.msk [vmem:[#allocation9 + $0x48] sm:$0xff] %vm530_vm1, %v696_v60 }
 0x1cb   :  { %556 = vst.msk [vmem:[#allocation9 + $0xc8] sm:$0xff] %vm530_vm1, %v720_v61  ;;  %v411_v62 = vpop.f32.mrf.mxu0 }
 0x1cc   :  { %v491_v63 = vpop.f32.mrf.mxu1  ;;  %539 = vst.msk [vmem:[#allocation9 + $0x40] sm:$0xff] %vm530_vm1, %v411_v62 }
 0x1cd   :  { %555 = vst.msk [vmem:[#allocation9 + $0xc0] sm:$0xff] %vm530_vm1, %v491_v63  ;;  %v699_v0 = vpop.f32.mrf.mxu0 }
 0x1ce   :  { %v723_v1 = vpop.f32.mrf.mxu1  ;;  %542 = vst.msk [vmem:[#allocation9 + $0x58] sm:$0xff] %vm530_vm1, %v699_v0 }
 0x1cf   :  { %558 = vst.msk [vmem:[#allocation9 + $0xd8] sm:$0xff] %vm530_vm1, %v723_v1  ;;  %v421_v2 = vpop.f32.mrf.mxu0 }
 0x1d0   :  { %v501_v3 = vpop.f32.mrf.mxu1  ;;  %541 = vst.msk [vmem:[#allocation9 + $0x50] sm:$0xff] %vm530_vm1, %v421_v2 }
 0x1d1   :  { %557 = vst.msk [vmem:[#allocation9 + $0xd0] sm:$0xff] %vm530_vm1, %v501_v3  ;;  %v702_v4 = vpop.f32.mrf.mxu0 }
 0x1d2   :  { %v726_v5 = vpop.f32.mrf.mxu1  ;;  %544 = vst.msk [vmem:[#allocation9 + $0x68] sm:$0xff] %vm530_vm1, %v702_v4 }
 0x1d3   :  { %560 = vst.msk [vmem:[#allocation9 + $0xe8] sm:$0xff] %vm530_vm1, %v726_v5  ;;  %v431_v6 = vpop.f32.mrf.mxu0 }
 0x1d4   :  { %v511_v7 = vpop.f32.mrf.mxu1  ;;  %543 = vst.msk [vmem:[#allocation9 + $0x60] sm:$0xff] %vm530_vm1, %v431_v6 }
 0x1d5   :  { %559 = vst.msk [vmem:[#allocation9 + $0xe0] sm:$0xff] %vm530_vm1, %v511_v7  ;;  %v705_v8 = vpop.f32.mrf.mxu0 }
 0x1d6   :  { %v729_v9 = vpop.f32.mrf.mxu1  ;;  %546 = vst.msk [vmem:[#allocation9 + $0x78] sm:$0xff] %vm530_vm1, %v705_v8 }
 0x1d7   :  { %562 = vst.msk [vmem:[#allocation9 + $0xf8] sm:$0xff] %vm530_vm1, %v729_v9  ;;  %v441_v10 = vpop.f32.mrf.mxu0 }
 0x1d8   :  { %v521_v11 = vpop.f32.mrf.mxu1  ;;  %545 = vst.msk [vmem:[#allocation9 + $0x70] sm:$0xff] %vm530_vm1, %v441_v10 }
 0x1d9   :  { %561 = vst.msk [vmem:[#allocation9 + $0xf0] sm:$0xff] %vm530_vm1, %v521_v11 }
 0x1da   :  { %823 = shalt.err (!%p820_p6)
}
 0x1db   :  { %574 = dma.vmem_to_hbm [thread:$0]  %s569_s5, 4096, %s981_s3, [#allocation5], %s848_s17, %s848_s17, %s849_s18  }
 0x1dc   :  { %840 = dma.done.wait [#allocation5], 4096  }
 0x1dd   :  { %841 = vsyncadd [#allocation5], 4294963200 }
 0x1de   :  { %578 = vsyncpa [#allocation4], 1 }
 0x1df   :  { %579 = vsyncpa [#allocation7], 1 }
 0x1e0   :  { %580 = vsyncpa [#allocation5], 1 }

</bundles_post_ra>
